<compile_context>
chip_gen: v6e
topology: v6e:2x2x1
jax: 0.10.0
libtpu: 0.0.40
codegen_flags: <defaults>
</compile_context>

<pallas_src>
import jax
import jax.numpy as jnp
from jax.experimental import pallas as pl
from jax.experimental.pallas import tpu as pltpu


def _round_up(n, m):
    return ((n + m - 1) // m) * m


def encoder_kernel(x_ref, w1_ref, b1_ref, w2_ref, b2_ref, out_ref):
    # Cast the activation tile to the weights' dtype in-register (bf16 MXU
    # inputs); accumulate in f32; bias add + tanh in f32.
    x = x_ref[...].astype(w1_ref.dtype)
    h = jnp.dot(x, w1_ref[...], preferred_element_type=jnp.float32)
    h = jnp.tanh(h + b1_ref[...])                      # b1 is (1, H) -> broadcasts
    z = jnp.dot(h.astype(w2_ref.dtype), w2_ref[...],
                preferred_element_type=jnp.float32)
    out_ref[...] = (z + b2_ref[...]).astype(out_ref.dtype)


def encoder_forward(x, w1, b1, w2, b2, *, tile_b=None, out_dtype=None):
    """Encoder forward: z = tanh(x @ w1 + b1) @ w2 + b2.

    x : [B, input_size]  (used as-is, no HBM-side padding / casting pass)
    w1: [input_size, hidden]   w2: [hidden, latent]   (ideally bf16, see prepare_params)
    b1: [1, hidden] / [hidden] b2: [1, latent] / [latent]  (kept f32)
    Returns [B, latent] in `out_dtype` (default: x.dtype).
    """
    B, in_size = x.shape
    hidden = w1.shape[1]
    latent = w2.shape[1]
    out_dtype = x.dtype if out_dtype is None else out_dtype

    b1 = b1.reshape(1, hidden).astype(jnp.float32)
    b2 = b2.reshape(1, latent).astype(jnp.float32)

    # Batch tile: multiple of 8 (f32 sublane).  Prefer >= 2 balanced tiles so
    # the batch axis can shard across both TensorCores on v7x; cap at 1024 to
    # amortize per-step overhead on v5e/v6e without blowing VMEM.
    if tile_b is None:
        tile_b = min(1024, _round_up(max(pl.cdiv(B, 2), 1), 8))
    tile_b = max(8, min(tile_b, _round_up(B, 8)))
    grid = (pl.cdiv(B, tile_b),)

    # VMEM budget from the real footprint (double-buffered tiles + resident
    # params + f32 intermediates), capped well below v7x's 64 MiB.
    isz_x = jnp.dtype(x.dtype).itemsize
    isz_w = jnp.dtype(w1.dtype).itemsize
    isz_o = jnp.dtype(out_dtype).itemsize
    param_bytes = 2 * ((in_size * hidden + hidden * latent) * isz_w
                       + (hidden + latent) * 4)
    tile_bytes = 2 * tile_b * (in_size * isz_x + latent * isz_o)
    interm_bytes = 2 * tile_b * (hidden + latent) * 4
    vmem_need = param_bytes + tile_bytes + interm_bytes
    vmem_limit = int(min(max(vmem_need + (8 << 20), 16 << 20), 48 << 20))

    return pl.pallas_call(
        encoder_kernel,
        out_shape=jax.ShapeDtypeStruct((B, latent), out_dtype),
        grid=grid,
        in_specs=[
            pl.BlockSpec((tile_b, in_size), lambda i: (i, 0)),   # x: tiled over batch
            pl.BlockSpec((in_size, hidden), lambda i: (0, 0)),   # w1: VMEM-resident
            pl.BlockSpec((1, hidden), lambda i: (0, 0)),         # b1: VMEM-resident
            pl.BlockSpec((hidden, latent), lambda i: (0, 0)),    # w2: VMEM-resident
            pl.BlockSpec((1, latent), lambda i: (0, 0)),         # b2: VMEM-resident
        ],
        out_specs=pl.BlockSpec((tile_b, latent), lambda i: (i, 0)),
        compiler_params=pltpu.CompilerParams(
            dimension_semantics=("parallel",),   # megacore sharding on v7x
            vmem_limit_bytes=vmem_limit,
        ),
    )(x, w1, b1, w2, b2)


def prepare_params(w1, b1, w2, b2, compute_dtype=jnp.bfloat16):
    """One-time parameter prep: weights [in,out] in bf16, biases f32 (1,H)."""
    return (w1.astype(compute_dtype),
            b1.reshape(1, -1).astype(jnp.float32),
            w2.astype(compute_dtype),
            b2.reshape(1, -1).astype(jnp.float32))


def init_params(key, input_size, hidden_size, latent_dim,
                compute_dtype=jnp.bfloat16):
    """PyTorch nn.Linear default init (U[-1/sqrt(fan_in), +]); weights [in,out]."""
    k1, k2, k3, k4 = jax.random.split(key, 4)
    bound1 = 1.0 / jnp.sqrt(input_size)
    bound2 = 1.0 / jnp.sqrt(hidden_size)
    w1 = jax.random.uniform(k1, (input_size, hidden_size), jnp.float32, -bound1, bound1)
    b1 = jax.random.uniform(k2, (1, hidden_size), jnp.float32, -bound1, bound1)
    w2 = jax.random.uniform(k3, (hidden_size, latent_dim), jnp.float32, -bound2, bound2)
    b2 = jax.random.uniform(k4, (1, latent_dim), jnp.float32, -bound2, bound2)
    return prepare_params(w1, b1, w2, b2, compute_dtype)


def _encoder_ref(x, w1, b1, w2, b2):
    """Reference mirroring the kernel's dtype path (bf16 MXU, f32 accum)."""
    xb = x.astype(w1.dtype)
    h = jnp.tanh(jnp.dot(xb, w1, preferred_element_type=jnp.float32) + b1)
    z = jnp.dot(h.astype(w2.dtype), w2, preferred_element_type=jnp.float32) + b2
    return z.astype(x.dtype)


if __name__ == "__main__":
    input_size, hidden_size, latent_dim = 32, 64, 16

    key = jax.random.PRNGKey(0)
    k_x, k_p, k_x2 = jax.random.split(key, 3)
    w1, b1, w2, b2 = init_params(k_p, input_size, hidden_size, latent_dim)

    # Small-shape run (matches the module's toy configuration).
    batch = 8
    x = jax.random.normal(k_x, (batch, input_size), jnp.float32)
    z = encoder_forward(x, w1, b1, w2, b2)
    jax.block_until_ready(z)
    assert z.shape == (batch, latent_dim)
    z_ref = _encoder_ref(x, w1, b1, w2, b2)
    assert jnp.allclose(z, z_ref, atol=1e-4, rtol=1e-4)
    # Sanity vs. full-f32 semantics (bf16 MXU inputs -> loose tolerance).
    z_f32 = jnp.tanh(x @ w1.astype(jnp.float32) + b1) @ w2.astype(jnp.float32) + b2
    assert jnp.allclose(z, z_f32, atol=5e-2, rtol=5e-2)

    # Larger batch: exercises 2-tile megacore split + ragged last block.
    batch2 = 1000  # deliberately not a multiple of the tile
    x2 = jax.random.normal(k_x2, (batch2, input_size), jnp.float32)
    z2 = encoder_forward(x2, w1, b1, w2, b2)
    jax.block_until_ready(z2)
    assert z2.shape == (batch2, latent_dim)
    z2_ref = _encoder_ref(x2, w1, b1, w2, b2)
    assert jnp.allclose(z2, z2_ref, atol=1e-4, rtol=1e-4)
    assert bool(jnp.all(jnp.isfinite(z2)))

    print("KERNEL_OK")
</pallas_src>

<mosaic_0001>
module attributes {stable_mosaic.version = 11 : i64} {
  func.func @encoder_kernel(%arg0: i32, %arg1: memref<8x32xf32, #tpu.memory_space<vmem>>, %arg2: memref<32x64xbf16, #tpu.memory_space<vmem>>, %arg3: memref<1x64xf32, #tpu.memory_space<vmem>>, %arg4: memref<64x16xbf16, #tpu.memory_space<vmem>>, %arg5: memref<1x16xf32, #tpu.memory_space<vmem>>, %arg6: memref<8x16xf32, #tpu.memory_space<vmem>>) attributes {dimension_semantics = [#tpu.dimension_semantics<parallel>], iteration_bounds = array<i64: 1>, scalar_prefetch = 0 : i64, scratch_operands = 0 : i64, tpu.core_type = #tpu.core_type<tc>, window_params = [{transform_indices = @transform_0, window_bounds = array<i64: 8, 32>}, {pipeline_mode = #tpu.pipeline_mode<synchronous>, transform_indices = @transform_1, window_bounds = array<i64: 32, 64>}, {pipeline_mode = #tpu.pipeline_mode<synchronous>, transform_indices = @transform_2, window_bounds = array<i64: 1, 64>}, {pipeline_mode = #tpu.pipeline_mode<synchronous>, transform_indices = @transform_3, window_bounds = array<i64: 64, 16>}, {pipeline_mode = #tpu.pipeline_mode<synchronous>, transform_indices = @transform_4, window_bounds = array<i64: 1, 16>}, {transform_indices = @transform_5, window_bounds = array<i64: 8, 16>}]} {
    %c0 = arith.constant 0 : index
    %c0_0 = arith.constant 0 : index
    %0 = vector.load %arg1[%c0, %c0_0] : memref<8x32xf32, #tpu.memory_space<vmem>>, vector<8x32xf32>
    %1 = arith.truncf %0 : vector<8x32xf32> to vector<8x32xbf16>
    %c0_1 = arith.constant 0 : index
    %c0_2 = arith.constant 0 : index
    %2 = vector.load %arg2[%c0_1, %c0_2] : memref<32x64xbf16, #tpu.memory_space<vmem>>, vector<32x64xbf16>
    %cst = arith.constant dense<0.000000e+00> : vector<8x64xf32>
    %3 = tpu.matmul %1, %2, %cst {dimension_numbers = #tpu.dot_dimension_numbers<[1], [0], [0], [1], [0, 0, 1, 1], [], []>} : vector<8x32xbf16>, vector<32x64xbf16>, vector<8x64xf32> -> vector<8x64xf32>
    %c0_3 = arith.constant 0 : index
    %c0_4 = arith.constant 0 : index
    %4 = vector.load %arg3[%c0_3, %c0_4] : memref<1x64xf32, #tpu.memory_space<vmem>>, vector<1x64xf32>
    %5 = vector.broadcast %4 : vector<1x64xf32> to vector<8x64xf32>
    %6 = arith.addf %3, %5 : vector<8x64xf32>
    %7 = math.tanh %6 : vector<8x64xf32>
    %8 = arith.truncf %7 : vector<8x64xf32> to vector<8x64xbf16>
    %c0_5 = arith.constant 0 : index
    %c0_6 = arith.constant 0 : index
    %9 = vector.load %arg4[%c0_5, %c0_6] : memref<64x16xbf16, #tpu.memory_space<vmem>>, vector<64x16xbf16>
    %cst_7 = arith.constant dense<0.000000e+00> : vector<8x16xf32>
    %10 = tpu.matmul %8, %9, %cst_7 {dimension_numbers = #tpu.dot_dimension_numbers<[1], [0], [0], [1], [0, 0, 1, 1], [], []>} : vector<8x64xbf16>, vector<64x16xbf16>, vector<8x16xf32> -> vector<8x16xf32>
    %c0_8 = arith.constant 0 : index
    %c0_9 = arith.constant 0 : index
    %11 = vector.load %arg5[%c0_8, %c0_9] : memref<1x16xf32, #tpu.memory_space<vmem>>, vector<1x16xf32>
    %12 = vector.broadcast %11 : vector<1x16xf32> to vector<8x16xf32>
    %13 = arith.addf %10, %12 : vector<8x16xf32>
    %c0_10 = arith.constant 0 : index
    %c0_11 = arith.constant 0 : index
    %14 = vector.load %arg6[%c0_10, %c0_11] : memref<8x16xf32, #tpu.memory_space<vmem>>, vector<8x16xf32>
    tpu.vector_store %arg6[%c0_10, %c0_11], %13 {strides = array<i32>} : memref<8x16xf32, #tpu.memory_space<vmem>>, vector<8x16xf32>,
    return
  }
  func.func @transform_0(%arg0: i32) -> (i32, i32) {
    %c0_i32 = arith.constant 0 : i32
    %c0_i32_0 = arith.constant 0 : i32
    return %arg0, %c0_i32 : i32, i32
  }
  func.func @transform_1(%arg0: i32) -> (i32, i32) {
    %c0_i32 = arith.constant 0 : i32
    %c0_i32_0 = arith.constant 0 : i32
    %c0_i32_1 = arith.constant 0 : i32
    return %c0_i32, %c0_i32_0 : i32, i32
  }
  func.func @transform_2(%arg0: i32) -> (i32, i32) {
    %c0_i32 = arith.constant 0 : i32
    %c0_i32_0 = arith.constant 0 : i32
    %c0_i32_1 = arith.constant 0 : i32
    return %c0_i32, %c0_i32_0 : i32, i32
  }
  func.func @transform_3(%arg0: i32) -> (i32, i32) {
    %c0_i32 = arith.constant 0 : i32
    %c0_i32_0 = arith.constant 0 : i32
    %c0_i32_1 = arith.constant 0 : i32
    return %c0_i32, %c0_i32_0 : i32, i32
  }
  func.func @transform_4(%arg0: i32) -> (i32, i32) {
    %c0_i32 = arith.constant 0 : i32
    %c0_i32_0 = arith.constant 0 : i32
    %c0_i32_1 = arith.constant 0 : i32
    return %c0_i32, %c0_i32_0 : i32, i32
  }
  func.func @transform_5(%arg0: i32) -> (i32, i32) {
    %c0_i32 = arith.constant 0 : i32
    %c0_i32_0 = arith.constant 0 : i32
    return %arg0, %c0_i32 : i32, i32
  }
}

</mosaic_0001>

<bundles_post_ra>
// kernel: tpu_custom_call.1
= control target key start
LH: loop header
LB: loop body
LE: loop exit
PB: predicated region body
PF: predicated region fallthrough
CT: control target
= control target key end

     0   :  { %v263_v1 = vmov 0.0   ;;  %vm264_vm0 = vmmov 0   ;;  %s326_s0 = inlined_call_operand.vmem [shape: f32[8,32], index: 0, kind: input, shape index: {}]   ;;  %s327_s1 = inlined_call_operand.vmem [shape: bf16[32,64], index: 1, kind: input, shape index: {}]   ;;  %s328_s2 = inlined_call_operand.vmem [shape: f32[1,64], index: 2, kind: input, shape index: {}]   ;;  %s329_s3 = inlined_call_operand.vmem [shape: bf16[64,16], index: 3, kind: input, shape index: {}]   ;;  %s330_s4 = inlined_call_operand.vmem [shape: f32[1,16], index: 4, kind: input, shape index: {}]   ;;  %s331_s5 = inlined_call_operand.hbm [shape: f32[8,16], index: 5, kind: output, shape index: {}]  }
   0x1   :  { %v233_v0 = vld [vmem:[%s327_s1 + $0x8] sm:$0xff]   ;;  %210 = vmatprep.subr.bf16.mxu0 %v263_v1  ;;  %218 = vmatprep.subr.bf16.mxu1 %v263_v1  ;;  %v234_v2 = vld [vmem:[%s327_s1] sm:$0xff]  }
   0x2   :  { %211 = vmatpush3.bf16.msra.mxu0 %v233_v0  ;;  %214 = vmatprep.mubr.msk.bf16.mxu0 %vm264_vm0, %v263_v1  ;;  %v22_v3 = vld [vmem:[%s326_s0] sm:$0xff] }
   0x3   :  { %212 = vmatprep.subr.bf16.mxu0 %v263_v1  ;;  %226 = vmatprep.mubr.msk.bf16.mxu1 %vm264_vm0, %v263_v1  ;;  %v23_v4 = vpack.c.bf16 %v22_v3, %v22_v3 }
   0x4   :  { %10 = vsyncpa [#allocation3], 0  ;;  %vm47_vm1 = vcmask 261120   ;;  %v235_v5 = vld [vmem:[%s329_s3 + $0x18] sm:$0xff]   ;;  %v236_v6 = vld [vmem:[%s329_s3 + $0x10] sm:$0xff]   ;;  %vm132_vm2 = vcmask 523264  }
   0x5   :  { %219 = vmatpush3.bf16.msra.mxu1 %v235_v5  ;;  %v237_v7 = vld [vmem:[%s329_s3 + $0x8] sm:$0xff]   ;;  %v238_v8 = vld [vmem:[%s329_s3] sm:$0xff]   ;;  %s265_s3 = smov [#allocation2]   ;;  %vm176_vm3 = vcmask 130048  }
   0x6   :  { %213 = vmatpush3.bf16.msra.mxu0 %v234_v2  ;;  %220 = vmatprep.subr.bf16.mxu1 %v263_v1  ;;  %v192_v9 = vld [vmem:[%s328_s2] ss:$0 sm:$0xff]  ;;  %s184_s9 = sshll.u32 %s265_s3, 4  ;;  %s185_s9 = int_to_ptr.vmem [resolvable:$true] %s184_s9 }
   0x7   :  { %v196_v17 = vld [vmem:[%s330_s4] ss:$0 sm:$0xff]  ;;  %s241_s2 = scalar_lea.vmem %s185_s9, 128  ;;  %p246_p1 = scmp.lt.s32.totalorder %s185_s9, %s185_s9 }
   0x8   :  { %p242_p0 = scmp.ne.s32.totalorder %s185_s9, %s241_s2  ;;  %p247_p2 = scmp.lt.s32.totalorder %s241_s2, %s241_s2 }
   0x9   :  { %215 = vmatmul.mubr.msk.bf16.vlgmr.msra.gmra.mxu0 %vm47_vm1, %v23_v4  ;;  %221 = vmatpush3.bf16.msra.mxu1 %v236_v6 }
   0xa   :  { %222 = vmatprep.subr.bf16.mxu1 %v263_v1  ;;  %p248_p3 = por %p247_p2, %p246_p1 }
   0xc   :  { %p249_p4 = pnand %p248_p3, %p242_p0 }
   0xd   :  { %223 = vmatpush3.bf16.msra.mxu1 %v237_v7 }
   0xe   :  { %224 = vmatprep.subr.bf16.mxu1 %v263_v1 }
  0x11   :  { %225 = vmatpush3.bf16.msra.mxu1 %v238_v8 }
  0xc9   :  { %v85_v10 = vpop.f32.mrf.mxu0 }
  0xca   :  { %v86_v11 = vadd.f32 %v192_v9, %v85_v10 }
  0xcb   :  { %v216_v12 = vpop.f32.mrf.mxu0 }
  0xcc   :  { %239 = vtanh.f32 %v86_v11 }
  0xcd   :  { %v88_v13 = vpop.f32.mrf.mxu0 }
  0xcf   :  { %v217_v14 = vpop.f32.mrf.mxu0 }
  0xd9   :  { %v240_v15 = vpop.eup %239 }
  0xda   :  { %v92_v16 = vpack.c.bf16 %v240_v15, %v240_v15 }
  0xdc   :  { %227 = vmatmul.mubr.msk.bf16.vlgmr.msra.gmra.mxu1 %vm132_vm2, %v92_v16 }
 0x19c   :  { %v170_v18 = vpop.f32.mrf.mxu1 }
 0x19d   :  { %v171_v19 = vadd.f32 %v196_v17, %v170_v18 }
 0x19e   :  { %v228_v20 = vpop.f32.mrf.mxu1 }
 0x19f   :  { %177 = vst.msk [vmem:[#allocation2] sm:$0xff] %vm176_vm3, %v171_v19 }
 0x1a0   :  { %v173_v21 = vpop.f32.mrf.mxu1 }
 0x1a1   :  { %252 = shalt.err (!%p249_p4)
}
 0x1a2   :  { %187 = dma.vmem_to_hbm [thread:$0]  %s185_s9, 128, %s331_s5, [#allocation3]   ;;  %v229_v22 = vpop.f32.mrf.mxu1 }
 0x1a3   :  { %261 = dma.done.wait [#allocation3], 128  }
 0x1a4   :  { %262 = vsyncadd [#allocation3], 4294967168 }
 0x1a5   :  { %191 = vsyncpa [#allocation3], 1 }

</bundles_post_ra>
